<compile_context>
chip_gen: v7x
topology: tpu7x:2x2x1
jax: 0.10.0
libtpu: 0.0.40
codegen_flags: <defaults>
</compile_context>

<pallas_src>
import functools
import math

import jax
import jax.numpy as jnp
from jax.experimental import pallas as pl
from jax.experimental.pallas import tpu as pltpu


def _round_up(n, m):
    return ((n + m - 1) // m) * m


def _predict_mse_kernel(x_ref, w1_ref, b1_ref, cp_ref, w2_ref, b2_ref,
                        w3_ref, b3_ref, o_ref, *, hidden_dim, hidden_pad, eps):
    # --- linear1: bf16 operands on the MXU, f32 accumulation ---
    h = jnp.dot(x_ref[...], w1_ref[...],
                preferred_element_type=jnp.float32) + b1_ref[...]

    # --- center-only LayerNorm over the *real* hidden_dim features ---
    # Padded hidden columns of h are exactly 0 (zero weight columns, zero bias),
    # so sum(h) over the padded axis equals the sum over the real features.
    mean = jnp.sum(h, axis=-1, keepdims=True) * (1.0 / hidden_dim)
    centered = h - mean
    ss = jnp.sum(centered * centered, axis=-1, keepdims=True)
    if hidden_pad != hidden_dim:
        # each padded column contributes (-mean)^2 to ss; remove that contribution
        ss = ss - float(hidden_pad - hidden_dim) * (mean * mean)
    std = jnp.sqrt(ss * (1.0 / (hidden_dim - 1)))          # torch .std(): unbiased (N-1)
    h = centered * pl.reciprocal(std + eps, approx=True) + cp_ref[...]
    h = jnp.maximum(h, 0.0)

    # --- linear2 + relu ---
    h = jnp.dot(h.astype(jnp.bfloat16), w2_ref[...],
                preferred_element_type=jnp.float32) + b2_ref[...]
    h = jnp.maximum(h, 0.0)

    # --- last_fc ---
    o_ref[...] = (jnp.dot(h.astype(jnp.bfloat16), w3_ref[...],
                          preferred_element_type=jnp.float32)
                  + b3_ref[...]).astype(o_ref.dtype)


def predict_mse_forward(x, params, *, eps=1e-6, batch_tile=512):
    """x: (B, num_inputs) float32. params: dict of (in_dim, out_dim)-layout weights + biases."""
    B, num_inputs = x.shape
    hidden_dim = params["w1"].shape[1]
    num_outputs = params["w3"].shape[1]

    # lane-dense padded dims (multiples of 128); batch tile multiple of 8 sublanes
    Ip = _round_up(num_inputs, 128)
    Hp = _round_up(hidden_dim, 128)
    Op = _round_up(num_outputs, 128)
    TB = min(batch_tile, _round_up(B, 8))
    Bp = _round_up(B, TB)

    # zero-padding is pure layout plumbing: padded input cols hit zero weight rows,
    # padded hidden cols have zero weights/bias (LayerNorm stats corrected in-kernel),
    # padded output cols / batch rows are sliced off below.
    xp = jnp.zeros((Bp, Ip), jnp.bfloat16).at[:B, :num_inputs].set(x.astype(jnp.bfloat16))
    w1 = jnp.zeros((Ip, Hp), jnp.bfloat16).at[:num_inputs, :hidden_dim].set(
        params["w1"].astype(jnp.bfloat16))
    w2 = jnp.zeros((Hp, Hp), jnp.bfloat16).at[:hidden_dim, :hidden_dim].set(
        params["w2"].astype(jnp.bfloat16))
    w3 = jnp.zeros((Hp, Op), jnp.bfloat16).at[:hidden_dim, :num_outputs].set(
        params["w3"].astype(jnp.bfloat16))
    b1 = jnp.zeros((1, Hp), jnp.float32).at[:, :hidden_dim].set(params["b1"])
    cp = jnp.zeros((1, Hp), jnp.float32).at[:, :hidden_dim].set(params["cp"])
    b2 = jnp.zeros((1, Hp), jnp.float32).at[:, :hidden_dim].set(params["b2"])
    b3 = jnp.zeros((1, Op), jnp.float32).at[:, :num_outputs].set(params["b3"])

    kernel = functools.partial(_predict_mse_kernel,
                               hidden_dim=hidden_dim, hidden_pad=Hp, eps=eps)

    grid = (Bp // TB,)
    const = lambda i: (0, 0)                      # resident weights / biases

    flops = 2 * Bp * (Ip * Hp + Hp * Hp + Hp * Op)
    bytes_accessed = (xp.size * 2 + (w1.size + w2.size + w3.size) * 2
                      + (b1.size + cp.size + b2.size + b3.size) * 4
                      + Bp * Op * 4)

    out = pl.pallas_call(
        kernel,
        out_shape=jax.ShapeDtypeStruct((Bp, Op), jnp.float32),
        grid_spec=pltpu.PrefetchScalarGridSpec(
            num_scalar_prefetch=0,
            grid=grid,
            in_specs=[
                pl.BlockSpec((TB, Ip), lambda i: (i, 0)),   # x: batch-tiled, double-buffered
                pl.BlockSpec((Ip, Hp), const),              # w1 resident
                pl.BlockSpec((1, Hp), const),               # b1
                pl.BlockSpec((1, Hp), const),               # center_param
                pl.BlockSpec((Hp, Hp), const),              # w2
                pl.BlockSpec((1, Hp), const),               # b2
                pl.BlockSpec((Hp, Op), const),              # w3
                pl.BlockSpec((1, Op), const),               # b3
            ],
            out_specs=pl.BlockSpec((TB, Op), lambda i: (i, 0)),
        ),
        compiler_params=pltpu.CompilerParams(
            dimension_semantics=("parallel",),              # megacore shard on v7x
            vmem_limit_bytes=48 * 1024 * 1024,              # safe on v5e/v6e/v7x
        ),
        cost_estimate=pl.CostEstimate(flops=flops,
                                      transcendentals=2 * Bp,
                                      bytes_accessed=bytes_accessed),
    )(xp, w1, b1, cp, w2, b2, w3, b3)

    return out[:B, :num_outputs]


# ----------------------- parameter init (deterministic, in-script) -----------------------

def xavier_uniform(key, fan_in, fan_out, gain=1.0):
    # matches torch.nn.init.xavier_uniform_ on a (fan_out, fan_in) weight;
    # built directly in transposed (fan_in, fan_out) layout.
    bound = gain * math.sqrt(6.0 / (fan_in + fan_out))
    return jax.random.uniform(key, (fan_in, fan_out), jnp.float32, -bound, bound)


def init_params(key, num_inputs, hidden_dim, num_outputs):
    k1, k2, k3 = jax.random.split(key, 3)
    return {
        "w1": xavier_uniform(k1, num_inputs, hidden_dim),
        "b1": jnp.zeros((1, hidden_dim), jnp.float32),
        "cp": jnp.zeros((1, hidden_dim), jnp.float32),   # LayerNorm center_param
        "w2": xavier_uniform(k2, hidden_dim, hidden_dim),
        "b2": jnp.zeros((1, hidden_dim), jnp.float32),
        "w3": xavier_uniform(k3, hidden_dim, num_outputs),
        "b3": jnp.zeros((1, num_outputs), jnp.float32),
    }


# ----------------------- pure-JAX f32 reference for sanity check -----------------------

def reference_forward(x, params, eps=1e-6):
    hidden_dim = params["w1"].shape[1]
    h = x @ params["w1"] + params["b1"]
    mean = h.mean(-1, keepdims=True)
    std = jnp.sqrt(((h - mean) ** 2).sum(-1, keepdims=True) / (hidden_dim - 1))
    h = (h - mean) / (std + eps) + params["cp"]
    h = jnp.maximum(h, 0.0)
    h = jnp.maximum(h @ params["w2"] + params["b2"], 0.0)
    return h @ params["w3"] + params["b3"]


if __name__ == "__main__":
    B, num_inputs, hidden_dim, num_outputs = 8, 16, 32, 8

    key = jax.random.PRNGKey(0)
    kx, kp = jax.random.split(key)
    x = jax.random.normal(kx, (B, num_inputs), jnp.float32)
    params = init_params(kp, num_inputs, hidden_dim, num_outputs)

    out = predict_mse_forward(x, params)
    out = jax.block_until_ready(out)

    ref = reference_forward(x, params)
    assert out.shape == (B, num_outputs)
    # bf16 MXU operands + approx reciprocal -> loosen tolerance vs the f32 reference
    assert jnp.allclose(out, ref, atol=5e-2, rtol=5e-2), "mismatch vs reference"

    print("KERNEL_OK")
</pallas_src>

<mosaic_0001>
module attributes {stable_mosaic.version = 11 : i64} {
  func.func @_predict_mse_kernel(%arg0: i32, %arg1: memref<8x128xbf16, #tpu.memory_space<vmem>>, %arg2: memref<128x128xbf16, #tpu.memory_space<vmem>>, %arg3: memref<1x128xf32, #tpu.memory_space<vmem>>, %arg4: memref<1x128xf32, #tpu.memory_space<vmem>>, %arg5: memref<128x128xbf16, #tpu.memory_space<vmem>>, %arg6: memref<1x128xf32, #tpu.memory_space<vmem>>, %arg7: memref<128x128xbf16, #tpu.memory_space<vmem>>, %arg8: memref<1x128xf32, #tpu.memory_space<vmem>>, %arg9: memref<8x128xf32, #tpu.memory_space<vmem>>) attributes {dimension_semantics = [#tpu.dimension_semantics<parallel>], iteration_bounds = array<i64: 1>, scalar_prefetch = 0 : i64, scratch_operands = 0 : i64, tpu.core_type = #tpu.core_type<tc>, window_params = [{transform_indices = @transform_0, window_bounds = array<i64: 8, 128>}, {pipeline_mode = #tpu.pipeline_mode<synchronous>, transform_indices = @transform_1, window_bounds = array<i64: 128, 128>}, {pipeline_mode = #tpu.pipeline_mode<synchronous>, transform_indices = @transform_2, window_bounds = array<i64: 1, 128>}, {pipeline_mode = #tpu.pipeline_mode<synchronous>, transform_indices = @transform_3, window_bounds = array<i64: 1, 128>}, {pipeline_mode = #tpu.pipeline_mode<synchronous>, transform_indices = @transform_4, window_bounds = array<i64: 128, 128>}, {pipeline_mode = #tpu.pipeline_mode<synchronous>, transform_indices = @transform_5, window_bounds = array<i64: 1, 128>}, {pipeline_mode = #tpu.pipeline_mode<synchronous>, transform_indices = @transform_6, window_bounds = array<i64: 128, 128>}, {pipeline_mode = #tpu.pipeline_mode<synchronous>, transform_indices = @transform_7, window_bounds = array<i64: 1, 128>}, {transform_indices = @transform_8, window_bounds = array<i64: 8, 128>}]} {
    %c0 = arith.constant 0 : index
    %c0_0 = arith.constant 0 : index
    %0 = vector.load %arg1[%c0, %c0_0] : memref<8x128xbf16, #tpu.memory_space<vmem>>, vector<8x128xbf16>
    %c0_1 = arith.constant 0 : index
    %c0_2 = arith.constant 0 : index
    %1 = vector.load %arg2[%c0_1, %c0_2] : memref<128x128xbf16, #tpu.memory_space<vmem>>, vector<128x128xbf16>
    %cst = arith.constant dense<0.000000e+00> : vector<8x128xf32>
    %2 = tpu.matmul %0, %1, %cst {dimension_numbers = #tpu.dot_dimension_numbers<[1], [0], [0], [1], [0, 0, 1, 1], [], []>} : vector<8x128xbf16>, vector<128x128xbf16>, vector<8x128xf32> -> vector<8x128xf32>
    %c0_3 = arith.constant 0 : index
    %c0_4 = arith.constant 0 : index
    %3 = vector.load %arg3[%c0_3, %c0_4] : memref<1x128xf32, #tpu.memory_space<vmem>>, vector<1x128xf32>
    %4 = vector.broadcast %3 : vector<1x128xf32> to vector<8x128xf32>
    %5 = arith.addf %2, %4 : vector<8x128xf32>
    %cst_5 = arith.constant dense<0.000000e+00> : vector<8xf32>
    %6 = vector.multi_reduction <add>, %5, %cst_5 [1] : vector<8x128xf32> to vector<8xf32>
    %7 = vector.shape_cast %6 : vector<8xf32> to vector<8x1xf32>
    %cst_6 = arith.constant 3.125000e-02 : f32
    %8 = vector.broadcast %cst_6 : f32 to vector<8x1xf32>
    %9 = arith.mulf %7, %8 : vector<8x1xf32>
    %10 = vector.broadcast %9 : vector<8x1xf32> to vector<8x128xf32>
    %11 = arith.subf %5, %10 : vector<8x128xf32>
    %12 = arith.mulf %11, %11 : vector<8x128xf32>
    %cst_7 = arith.constant dense<0.000000e+00> : vector<8xf32>
    %13 = vector.multi_reduction <add>, %12, %cst_7 [1] : vector<8x128xf32> to vector<8xf32>
    %14 = vector.shape_cast %13 : vector<8xf32> to vector<8x1xf32>
    %15 = arith.mulf %9, %9 : vector<8x1xf32>
    %cst_8 = arith.constant 9.600000e+01 : f32
    %16 = vector.broadcast %cst_8 : f32 to vector<8x1xf32>
    %17 = arith.mulf %16, %15 : vector<8x1xf32>
    %18 = arith.subf %14, %17 : vector<8x1xf32>
    %cst_9 = arith.constant 0.0322580636 : f32
    %19 = vector.broadcast %cst_9 : f32 to vector<8x1xf32>
    %20 = arith.mulf %18, %19 : vector<8x1xf32>
    %21 = math.sqrt %20 : vector<8x1xf32>
    %cst_10 = arith.constant 9.99999997E-7 : f32
    %22 = vector.broadcast %cst_10 : f32 to vector<8x1xf32>
    %23 = arith.addf %21, %22 : vector<8x1xf32>
    %24 = tpu.reciprocal %23 {approx = true} : vector<8x1xf32> -> vector<8x1xf32>
    %25 = vector.broadcast %24 : vector<8x1xf32> to vector<8x128xf32>
    %26 = arith.mulf %11, %25 : vector<8x128xf32>
    %c0_11 = arith.constant 0 : index
    %c0_12 = arith.constant 0 : index
    %27 = vector.load %arg4[%c0_11, %c0_12] : memref<1x128xf32, #tpu.memory_space<vmem>>, vector<1x128xf32>
    %28 = vector.broadcast %27 : vector<1x128xf32> to vector<8x128xf32>
    %29 = arith.addf %26, %28 : vector<8x128xf32>
    %cst_13 = arith.constant 0.000000e+00 : f32
    %30 = vector.broadcast %cst_13 : f32 to vector<8x128xf32>
    %31 = arith.maximumf %29, %30 : vector<8x128xf32>
    %32 = arith.truncf %31 : vector<8x128xf32> to vector<8x128xbf16>
    %c0_14 = arith.constant 0 : index
    %c0_15 = arith.constant 0 : index
    %33 = vector.load %arg5[%c0_14, %c0_15] : memref<128x128xbf16, #tpu.memory_space<vmem>>, vector<128x128xbf16>
    %cst_16 = arith.constant dense<0.000000e+00> : vector<8x128xf32>
    %34 = tpu.matmul %32, %33, %cst_16 {dimension_numbers = #tpu.dot_dimension_numbers<[1], [0], [0], [1], [0, 0, 1, 1], [], []>} : vector<8x128xbf16>, vector<128x128xbf16>, vector<8x128xf32> -> vector<8x128xf32>
    %c0_17 = arith.constant 0 : index
    %c0_18 = arith.constant 0 : index
    %35 = vector.load %arg6[%c0_17, %c0_18] : memref<1x128xf32, #tpu.memory_space<vmem>>, vector<1x128xf32>
    %36 = vector.broadcast %35 : vector<1x128xf32> to vector<8x128xf32>
    %37 = arith.addf %34, %36 : vector<8x128xf32>
    %cst_19 = arith.constant 0.000000e+00 : f32
    %38 = vector.broadcast %cst_19 : f32 to vector<8x128xf32>
    %39 = arith.maximumf %37, %38 : vector<8x128xf32>
    %40 = arith.truncf %39 : vector<8x128xf32> to vector<8x128xbf16>
    %c0_20 = arith.constant 0 : index
    %c0_21 = arith.constant 0 : index
    %41 = vector.load %arg7[%c0_20, %c0_21] : memref<128x128xbf16, #tpu.memory_space<vmem>>, vector<128x128xbf16>
    %cst_22 = arith.constant dense<0.000000e+00> : vector<8x128xf32>
    %42 = tpu.matmul %40, %41, %cst_22 {dimension_numbers = #tpu.dot_dimension_numbers<[1], [0], [0], [1], [0, 0, 1, 1], [], []>} : vector<8x128xbf16>, vector<128x128xbf16>, vector<8x128xf32> -> vector<8x128xf32>
    %c0_23 = arith.constant 0 : index
    %c0_24 = arith.constant 0 : index
    %43 = vector.load %arg8[%c0_23, %c0_24] : memref<1x128xf32, #tpu.memory_space<vmem>>, vector<1x128xf32>
    %44 = vector.broadcast %43 : vector<1x128xf32> to vector<8x128xf32>
    %45 = arith.addf %42, %44 : vector<8x128xf32>
    %c0_25 = arith.constant 0 : index
    %c0_26 = arith.constant 0 : index
    %46 = vector.load %arg9[%c0_25, %c0_26] : memref<8x128xf32, #tpu.memory_space<vmem>>, vector<8x128xf32>
    tpu.vector_store %arg9[%c0_25, %c0_26], %45 {strides = array<i32>} : memref<8x128xf32, #tpu.memory_space<vmem>>, vector<8x128xf32>,
    return
  }
  func.func @transform_0(%arg0: i32) -> (i32, i32) {
    %c0_i32 = arith.constant 0 : i32
    %c0_i32_0 = arith.constant 0 : i32
    return %arg0, %c0_i32 : i32, i32
  }
  func.func @transform_1(%arg0: i32) -> (i32, i32) {
    %c0_i32 = arith.constant 0 : i32
    %c0_i32_0 = arith.constant 0 : i32
    %c0_i32_1 = arith.constant 0 : i32
    return %c0_i32, %c0_i32_0 : i32, i32
  }
  func.func @transform_2(%arg0: i32) -> (i32, i32) {
    %c0_i32 = arith.constant 0 : i32
    %c0_i32_0 = arith.constant 0 : i32
    %c0_i32_1 = arith.constant 0 : i32
    return %c0_i32, %c0_i32_0 : i32, i32
  }
  func.func @transform_3(%arg0: i32) -> (i32, i32) {
    %c0_i32 = arith.constant 0 : i32
    %c0_i32_0 = arith.constant 0 : i32
    %c0_i32_1 = arith.constant 0 : i32
    return %c0_i32, %c0_i32_0 : i32, i32
  }
  func.func @transform_4(%arg0: i32) -> (i32, i32) {
    %c0_i32 = arith.constant 0 : i32
    %c0_i32_0 = arith.constant 0 : i32
    %c0_i32_1 = arith.constant 0 : i32
    return %c0_i32, %c0_i32_0 : i32, i32
  }
  func.func @transform_5(%arg0: i32) -> (i32, i32) {
    %c0_i32 = arith.constant 0 : i32
    %c0_i32_0 = arith.constant 0 : i32
    %c0_i32_1 = arith.constant 0 : i32
    return %c0_i32, %c0_i32_0 : i32, i32
  }
  func.func @transform_6(%arg0: i32) -> (i32, i32) {
    %c0_i32 = arith.constant 0 : i32
    %c0_i32_0 = arith.constant 0 : i32
    %c0_i32_1 = arith.constant 0 : i32
    return %c0_i32, %c0_i32_0 : i32, i32
  }
  func.func @transform_7(%arg0: i32) -> (i32, i32) {
    %c0_i32 = arith.constant 0 : i32
    %c0_i32_0 = arith.constant 0 : i32
    %c0_i32_1 = arith.constant 0 : i32
    return %c0_i32, %c0_i32_0 : i32, i32
  }
  func.func @transform_8(%arg0: i32) -> (i32, i32) {
    %c0_i32 = arith.constant 0 : i32
    %c0_i32_0 = arith.constant 0 : i32
    return %arg0, %c0_i32 : i32, i32
  }
}

</mosaic_0001>

<bundles_post_ra>
// kernel: tpu_custom_call.1
= control target key start
LH: loop header
LB: loop body
LE: loop exit
PB: predicated region body
PF: predicated region fallthrough
CT: control target
= control target key end

     0   :  { %13 = vsyncpa [#allocation3], 0  ;;  %s904_s0 = inlined_call_operand.hbm [shape: bf16[8,128], index: 0, kind: input, shape index: {}]   ;;  %s905_s1 = inlined_call_operand.hbm [shape: bf16[128,128], index: 1, kind: input, shape index: {}]   ;;  %s906_s2 = inlined_call_operand.vmem [shape: f32[1,128], index: 2, kind: input, shape index: {}]   ;;  %s907_s3 = inlined_call_operand.vmem [shape: f32[1,128], index: 3, kind: input, shape index: {}]   ;;  %s908_s4 = inlined_call_operand.hbm [shape: bf16[128,128], index: 4, kind: input, shape index: {}]   ;;  %s909_s5 = inlined_call_operand.vmem [shape: f32[1,128], index: 5, kind: input, shape index: {}]   ;;  %s910_s6 = inlined_call_operand.hbm [shape: bf16[128,128], index: 6, kind: input, shape index: {}]   ;;  %s911_s7 = inlined_call_operand.vmem [shape: f32[1,128], index: 7, kind: input, shape index: {}]   ;;  %s912_s8 = inlined_call_operand.hbm [shape: f32[8,128], index: 8, kind: output, shape index: {}]  }
   0x1   :  { %14 = vsyncpa [#allocation6], 0 }
   0x2   :  { %15 = vsyncpa [#allocation9], 0 }
   0x3   :  { %16 = vsyncpa [#allocation4], 0  ;;  %s739_s27 = smov [#allocation5]   ;;  %s621_s9 = scalar_lea.hbm %s905_s1, 1024 }
   0x4   :  { %s32_s28 = sshll.u32 %s739_s27, 4  ;;  %p622_p0 = scmp.ne.s32.totalorder %s905_s1, %s621_s9  ;;  %s33_s28 = int_to_ptr.vmem [resolvable:$true] %s32_s28 }
   0x5   :  { %p625_p1 = scmp.lt.u32.totalorder %s621_s9, %s905_s1 }
   0x7   :  { %p627_p2 = pnand %p625_p1, %p622_p0 }
   0x9   :  { %630 = shalt.err (!%p627_p2)
}
   0xa   :  { %s631_s14 = scalar_lea.vmem %s33_s28, 1024  ;;  %p636_p4 = scmp.lt.s32.totalorder %s33_s28, %s33_s28 }
   0xb   :  { %p632_p3 = scmp.ne.s32.totalorder %s33_s28, %s631_s14  ;;  %p637_p5 = scmp.lt.s32.totalorder %s631_s14, %s631_s14 }
   0xd   :  { %p638_p6 = por %p637_p5, %p636_p4 }
   0xf   :  { %p639_p7 = pnand %p638_p6, %p632_p3 }
  0x11   :  { %642 = shalt.err (!%p639_p7)
}
  0x12   :  { %s740_s15 = smov 64   ;;  %s741_s16 = smov 4  }
  0x13   :  { %38 = dma.hbm_to_vmem [thread:$0]  %s905_s1, 1024, %s33_s28, [#allocation6], %s740_s15, %s740_s15, %s741_s16  }
  0x14   :  { %s742_s19 = smov [#allocation2]   ;;  %s743_s21 = smov [#allocation7]  }
  0x15   :  { %s23_s20 = sshll.u32 %s742_s19, 4  ;;  %s48_s22 = sshll.u32 %s743_s21, 4  ;;  %s24_s20 = int_to_ptr.vmem [resolvable:$true] %s23_s20  ;;  %s49_s22 = int_to_ptr.vmem [resolvable:$true] %s48_s22 }
  0x16   :  { %s643_s25 = scalar_lea.hbm %s904_s0, 64 }
  0x17   :  { %p644_p8 = scmp.ne.s32.totalorder %s904_s0, %s643_s25  ;;  %p647_p9 = scmp.lt.u32.totalorder %s643_s25, %s904_s0 }
  0x19   :  { %p649_p10 = pnand %p647_p9, %p644_p8 }
  0x1b   :  { %652 = shalt.err (!%p649_p10)
}
  0x1c   :  { %s653_s1 = scalar_lea.vmem %s24_s20, 64  ;;  %p658_p12 = scmp.lt.s32.totalorder %s24_s20, %s24_s20 }
  0x1d   :  { %p654_p11 = scmp.ne.s32.totalorder %s24_s20, %s653_s1  ;;  %p659_p13 = scmp.lt.s32.totalorder %s653_s1, %s653_s1 }
  0x1f   :  { %p660_p0 = por %p659_p13, %p658_p12 }
  0x21   :  { %p661_p1 = pnand %p660_p0, %p654_p11 }
  0x23   :  { %664 = shalt.err (!%p661_p1)
}
  0x24   :  { %26 = dma.hbm_to_vmem [thread:$0]  %s904_s0, 64, %s24_s20, [#allocation3]  }
  0x25   :  { %s665_s12 = scalar_lea.hbm %s908_s4, 1024 }
  0x26   :  { %p666_p2 = scmp.ne.s32.totalorder %s908_s4, %s665_s12  ;;  %p669_p3 = scmp.lt.u32.totalorder %s665_s12, %s908_s4 }
  0x28   :  { %p671_p4 = pnand %p669_p3, %p666_p2 }
  0x2a   :  { %674 = shalt.err (!%p671_p4)
}
  0x2b   :  { %s675_s19 = scalar_lea.vmem %s49_s22, 1024  ;;  %p680_p6 = scmp.lt.s32.totalorder %s49_s22, %s49_s22 }
  0x2c   :  { %p676_p5 = scmp.ne.s32.totalorder %s49_s22, %s675_s19  ;;  %p681_p7 = scmp.lt.s32.totalorder %s675_s19, %s675_s19 }
  0x2e   :  { %p682_p8 = por %p681_p7, %p680_p6 }
  0x30   :  { %p683_p9 = pnand %p682_p8, %p676_p5 }
  0x32   :  { %686 = shalt.err (!%p683_p9)
}
  0x33   :  { %54 = dma.hbm_to_vmem [thread:$0]  %s908_s4, 1024, %s49_s22, [#allocation6], %s740_s15, %s740_s15, %s741_s16  }
  0x34   :  { %s744_s21 = smov [#allocation8]   ;;  %s687_s26 = scalar_lea.hbm %s910_s6, 1024 }
  0x35   :  { %s62_s23 = sshll.u32 %s744_s21, 4  ;;  %p688_p10 = scmp.ne.s32.totalorder %s910_s6, %s687_s26  ;;  %s63_s23 = int_to_ptr.vmem [resolvable:$true] %s62_s23 }
  0x36   :  { %p691_p11 = scmp.lt.u32.totalorder %s687_s26, %s910_s6 }
  0x38   :  { %p693_p12 = pnand %p691_p11, %p688_p10 }
  0x3a   :  { %696 = shalt.err (!%p693_p12)
}
  0x3b   :  { %s697_s28 = scalar_lea.vmem %s63_s23, 1024  ;;  %p702_p0 = scmp.lt.s32.totalorder %s63_s23, %s63_s23 }
  0x3c   :  { %p698_p13 = scmp.ne.s32.totalorder %s63_s23, %s697_s28  ;;  %p703_p1 = scmp.lt.s32.totalorder %s697_s28, %s697_s28 }
  0x3e   :  { %p704_p2 = por %p703_p1, %p702_p0 }
  0x40   :  { %p705_p3 = pnand %p704_p2, %p698_p13 }
  0x42   :  { %708 = shalt.err (!%p705_p3)
}
  0x43   :  { %68 = dma.hbm_to_vmem [thread:$0]  %s910_s6, 1024, %s63_s23, [#allocation9], %s740_s15, %s740_s15, %s741_s16  }
  0x44   :  { %731 = dma.done.wait [#allocation3], 64  }
  0x45   :  { %732 = vsyncadd [#allocation3], 4294967232 }
  0x46   :  { %733 = dma.done.wait [#allocation6], 2048  }
  0x47   :  { %734 = vsyncadd [#allocation6], 4294965248 }
  0x48   :  { %735 = dma.done.wait [#allocation9], 1024  }
  0x49   :  { %736 = vsyncadd [#allocation9], 4294966272  ;;  %v745_v0 = vmov 0.0   ;;  %vm746_vm0 = vmmov 0   ;;  %v593_v1 = vld [vmem:[#allocation5] sm:$0xff]   ;;  %v594_v2 = vld [vmem:[#allocation5 + $0x8] sm:$0xff]  }
  0x4a   :  { %524 = vmatprep.subr.bf16.mxu0 %v745_v0  ;;  %540 = vmatprep.mubr.msk.bf16.mxu0 %vm746_vm0, %v745_v0  ;;  %v595_v3 = vld [vmem:[#allocation5 + $0x10] sm:$0xff]   ;;  %v596_v4 = vld [vmem:[#allocation5 + $0x18] sm:$0xff]   ;;  %v597_v5 = vld [vmem:[#allocation5 + $0x20] sm:$0xff]   ;;  %s747_s12 = smov [#allocation10]  }
  0x4b   :  { %544 = vmatprep.subr.bf16.mxu1 %v745_v0  ;;  %560 = vmatprep.mubr.msk.bf16.mxu1 %vm746_vm0, %v745_v0  ;;  %v598_v6 = vld [vmem:[#allocation5 + $0x28] sm:$0xff]   ;;  %v599_v7 = vld [vmem:[#allocation5 + $0x30] sm:$0xff]   ;;  %v600_v8 = vld [vmem:[#allocation5 + $0x38] sm:$0xff]   ;;  %s458_s13 = sshll.u32 %s747_s12, 4  ;;  %s459_s13 = int_to_ptr.vmem [resolvable:$true] %s458_s13 }
  0x4c   :  { %525 = vmatpush3.bf16.msra.mxu0 %v593_v1  ;;  %v84_v9 = vld [vmem:[#allocation2] sm:$0xf]  ;;  %v601_v20 = vld [vmem:[#allocation7] sm:$0xff]   ;;  %v602_v21 = vld [vmem:[#allocation7 + $0x8] sm:$0xff]   ;;  %p714_p5 = scmp.lt.s32.totalorder %s459_s13, %s459_s13 }
  0x4d   :  { %526 = vmatprep.subr.bf16.mxu0 %v745_v0  ;;  %v469_v10 = vld [vmem:[%s906_s2] ss:$0 sm:$0xff]  ;;  %545 = vmatpush3.bf16.msra.mxu1 %v601_v20  ;;  %v603_v22 = vld [vmem:[#allocation7 + $0x10] sm:$0xff]   ;;  %v605_v24 = vld [vmem:[#allocation7 + $0x20] sm:$0xff]  }
  0x4e   :  { %546 = vmatprep.subr.bf16.mxu1 %v745_v0  ;;  %v604_v23 = vld [vmem:[#allocation7 + $0x18] sm:$0xff]   ;;  %v606_v25 = vld [vmem:[#allocation7 + $0x28] sm:$0xff]   ;;  %v607_v26 = vld [vmem:[#allocation7 + $0x30] sm:$0xff]  }
  0x4f   :  { %v608_v27 = vld [vmem:[#allocation7 + $0x38] sm:$0xff]   ;;  %v609_v28 = vld [vmem:[#allocation8] sm:$0xff]   ;;  %v610_v29 = vld [vmem:[#allocation8 + $0x8] sm:$0xff]  }
  0x50   :  { %527 = vmatpush3.bf16.msra.mxu0 %v594_v2  ;;  %v611_v30 = vld [vmem:[#allocation8 + $0x10] sm:$0xff]   ;;  %v612_v31 = vld [vmem:[#allocation8 + $0x18] sm:$0xff]   ;;  %v613_v32 = vld [vmem:[#allocation8 + $0x20] sm:$0xff]  }
  0x51   :  { %528 = vmatprep.subr.bf16.mxu0 %v745_v0  ;;  %547 = vmatpush3.bf16.msra.mxu1 %v602_v21  ;;  %v614_v33 = vld [vmem:[#allocation8 + $0x28] sm:$0xff]   ;;  %v478_v46 = vld [vmem:[%s907_s3] ss:$0 sm:$0xff]  ;;  %v615_v51 = vld [vmem:[#allocation8 + $0x30] sm:$0xff]  }
  0x52   :  { %548 = vmatprep.subr.bf16.mxu1 %v745_v0  ;;  %v616_v52 = vld [vmem:[#allocation8 + $0x38] sm:$0xff]  }
  0x53   :  { %v479_v53 = vld [vmem:[%s909_s5] ss:$0 sm:$0xff]  ;;  %s709_s5 = scalar_lea.vmem %s459_s13, 128 }
  0x54   :  { %529 = vmatpush3.bf16.msra.mxu0 %v595_v3  ;;  %v488_v61 = vld [vmem:[%s911_s7] ss:$0 sm:$0xff]  ;;  %p710_p4 = scmp.ne.s32.totalorder %s459_s13, %s709_s5  ;;  %p715_p6 = scmp.lt.s32.totalorder %s709_s5, %s709_s5 }
  0x55   :  { %530 = vmatprep.subr.bf16.mxu0 %v745_v0  ;;  %549 = vmatpush3.bf16.msra.mxu1 %v603_v22 }
  0x56   :  { %550 = vmatprep.subr.bf16.mxu1 %v745_v0  ;;  %p716_p7 = por %p715_p6, %p714_p5 }
  0x58   :  { %531 = vmatpush3.bf16.msra.mxu0 %v596_v4  ;;  %p717_p8 = pnand %p716_p7, %p710_p4 }
  0x59   :  { %532 = vmatprep.subr.bf16.mxu0 %v745_v0  ;;  %551 = vmatpush3.bf16.msra.mxu1 %v604_v23 }
  0x5a   :  { %552 = vmatprep.subr.bf16.mxu1 %v745_v0 }
  0x5c   :  { %533 = vmatpush3.bf16.msra.mxu0 %v597_v5 }
  0x5d   :  { %534 = vmatprep.subr.bf16.mxu0 %v745_v0  ;;  %553 = vmatpush3.bf16.msra.mxu1 %v605_v24 }
  0x5e   :  { %554 = vmatprep.subr.bf16.mxu1 %v745_v0 }
  0x60   :  { %535 = vmatpush3.bf16.msra.mxu0 %v598_v6 }
  0x61   :  { %536 = vmatprep.subr.bf16.mxu0 %v745_v0  ;;  %555 = vmatpush3.bf16.msra.mxu1 %v606_v25 }
  0x62   :  { %556 = vmatprep.subr.bf16.mxu1 %v745_v0 }
  0x64   :  { %537 = vmatpush3.bf16.msra.mxu0 %v599_v7 }
  0x65   :  { %538 = vmatprep.subr.bf16.mxu0 %v745_v0  ;;  %557 = vmatpush3.bf16.msra.mxu1 %v607_v26 }
  0x66   :  { %558 = vmatprep.subr.bf16.mxu1 %v745_v0 }
  0x68   :  { %539 = vmatpush3.bf16.msra.mxu0 %v600_v8 }
  0x69   :  { %564 = vmatprep.subr.bf16.mxu0 %v745_v0  ;;  %559 = vmatpush3.bf16.msra.mxu1 %v608_v27 }
  0x6b   :  { %541 = vmatmul.mubr.bf16.vlgmr.msra.gmra.mrb[0].mxu0 %v84_v9 }
  0x6c   :  { %580 = vmatprep.mubr.msk.bf16.mxu0 %vm746_vm0, %v745_v0  ;;  %565 = vmatpush3.bf16.msra.mxu0 %v609_v28 }
  0x6d   :  { %566 = vmatprep.subr.bf16.mxu0 %v745_v0 }
  0x70   :  { %567 = vmatpush3.bf16.msra.mxu0 %v610_v29 }
  0x71   :  { %568 = vmatprep.subr.bf16.mxu0 %v745_v0 }
  0x74   :  { %569 = vmatpush3.bf16.msra.mxu0 %v611_v30 }
  0x75   :  { %570 = vmatprep.subr.bf16.mxu0 %v745_v0 }
  0x78   :  { %571 = vmatpush3.bf16.msra.mxu0 %v612_v31 }
  0x79   :  { %572 = vmatprep.subr.bf16.mxu0 %v745_v0 }
  0x7c   :  { %573 = vmatpush3.bf16.msra.mxu0 %v613_v32 }
  0x7d   :  { %574 = vmatprep.subr.bf16.mxu0 %v745_v0 }
  0x80   :  { %575 = vmatpush3.bf16.msra.mxu0 %v614_v33 }
  0x81   :  { %576 = vmatprep.subr.bf16.mxu0 %v745_v0 }
  0x84   :  { %577 = vmatpush3.bf16.msra.mxu0 %v615_v51 }
  0x85   :  { %578 = vmatprep.subr.bf16.mxu0 %v745_v0 }
  0x88   :  { %579 = vmatpush3.bf16.msra.mxu0 %v616_v52 }
 0x13e   :  { %v190_v11 = vpop.f32.mrb[0].mxu0 }
 0x13f   :  { %v191_v12 = vadd.f32 %v469_v10, %v190_v11  ;;  %v542_v13 = vpop.f32.mrb[1].mxu0 }
 0x140   :  { %v193_v14 = vpop.f32.mrb[2].mxu0 }
 0x141   :  { %196 = vadd.xlane.f32.xlu0 %v191_v12  ;;  %v543_v15 = vpop.f32.mrb[3].mxu0 }
 0x1ce   :  { %v197_v16 = vpop.xlane.xlu0 %196 }
 0x1cf   :  { %v198_v17 = vmul.f32 0.03125, %v197_v16 }
 0x1d1   :  { %v199_v18 = vsub.f32 %v191_v12, %v198_v17  ;;  %v203_v34 = vmul.f32 %v198_v17, %v198_v17 }
 0x1d3   :  { %v200_v19 = vmul.f32 %v199_v18, %v199_v18  ;;  %v204_v35 = vmul.f32 96.0, %v203_v34 }
 0x1d5   :  { %201 = vadd.xlane.f32.xlu0 %v200_v19 }
 0x262   :  { %v202_v36 = vpop.xlane.xlu0 %201 }
 0x263   :  { %v205_v37 = vsub.f32 %v202_v36, %v204_v35 }
 0x265   :  { %v206_v38 = vmul.f32 0.032258064, %v205_v37 }
 0x267   :  { %617 = vrsqrt.f32 %v206_v38  ;;  %vm209_vm1 = vcmp.eq.f32.partialorder %v206_v38, inf  ;;  %v212_v41 = vand.u32 2147483648, %v206_v38  ;;  %vm211_vm2 = vcmp.eq.f32.partialorder %v206_v38, 0.0 }
 0x271   :  { %v618_v39 = vpop.eup %617 }
 0x272   :  { %v208_v40 = vmul.f32 %v618_v39, %v206_v38 }
 0x274   :  { %v210_v42 = vsel %vm209_vm1, %v206_v38, %v208_v40 }
 0x275   :  { %v213_v43 = vsel %vm211_vm2, %v212_v41, %v210_v42 }
 0x276   :  { %v214_v44 = vadd.f32 1e-06, %v213_v43 }
 0x278   :  { %619 = vrcp.f32 %v214_v44 }
 0x282   :  { %v620_v45 = vpop.eup %619 }
 0x283   :  { %v216_v47 = vmul.f32 %v620_v45, %v199_v18 }
 0x285   :  { %v224_v48 = vadd.f32 %v478_v46, %v216_v47 }
 0x287   :  { %v225_v49 = vmax.f32 %v224_v48, 0.0 }
 0x289   :  { %v226_v50 = vpack.c.bf16 %v225_v49, %v225_v49 }
 0x28b   :  { %561 = vmatmul.mubr.bf16.vlgmr.msra.gmra.mrb[0].mxu1 %v226_v50 }
 0x35e   :  { %v332_v54 = vpop.f32.mrb[0].mxu1 }
 0x35f   :  { %v333_v55 = vadd.f32 %v479_v53, %v332_v54  ;;  %v562_v56 = vpop.f32.mrb[1].mxu1 }
 0x360   :  { %v335_v57 = vpop.f32.mrb[2].mxu1 }
 0x361   :  { %v338_v58 = vmax.f32 %v333_v55, 0.0  ;;  %v563_v59 = vpop.f32.mrb[3].mxu1 }
 0x363   :  { %v339_v60 = vpack.c.bf16 %v338_v58, %v338_v58 }
 0x365   :  { %581 = vmatmul.mubr.bf16.vlgmr.msra.gmra.mrb[4].mxu0 %v339_v60 }
 0x438   :  { %v445_v62 = vpop.f32.mrb[4].mxu0 }
 0x439   :  { %v446_v63 = vadd.f32 %v488_v61, %v445_v62  ;;  %v582_v0 = vpop.f32.mrb[5].mxu0 }
 0x43a   :  { %v448_v1 = vpop.f32.mrb[6].mxu0 }
 0x43b   :  { %451 = vst [vmem:[#allocation10] sm:$0xff] %v446_v63  ;;  %v583_v2 = vpop.f32.mrb[7].mxu0 }
 0x43c   :  { %720 = shalt.err (!%p717_p8)
}
 0x43d   :  { %s721_s7 = scalar_lea.hbm %s912_s8, 128 }
 0x43e   :  { %p722_p9 = scmp.ne.s32.totalorder %s912_s8, %s721_s7  ;;  %p725_p10 = scmp.lt.u32.totalorder %s721_s7, %s912_s8 }
 0x440   :  { %p727_p11 = pnand %p725_p10, %p722_p9 }
 0x442   :  { %730 = shalt.err (!%p727_p11)
}
 0x443   :  { %461 = dma.vmem_to_hbm [thread:$0]  %s459_s13, 128, %s912_s8, [#allocation4]  }
 0x444   :  { %737 = dma.done.wait [#allocation4], 128  }
 0x445   :  { %738 = vsyncadd [#allocation4], 4294967168 }
 0x446   :  { %465 = vsyncpa [#allocation3], 1 }
 0x447   :  { %466 = vsyncpa [#allocation6], 1 }
 0x448   :  { %467 = vsyncpa [#allocation9], 1 }
 0x449   :  { %468 = vsyncpa [#allocation4], 1 }

</bundles_post_ra>
